<compile_context>
chip_gen: v6e
topology: v6e:2x2x1
jax: 0.10.0
libtpu: 0.0.40
codegen_flags: <defaults>
</compile_context>

<pallas_src>
import math
import jax
import jax.numpy as jnp
from jax.experimental import pallas as pl
from jax.experimental.pallas import tpu as pltpu

IN_FEATURES = 784
H1 = 256
H2 = 128
OUT = 10
OUT_PAD = 128  # lane-dense output slab; wrapper slices [:, :OUT]


def mlp_kernel(x_ref, w1_ref, w2_ref, w3_ref, o_ref):
    # x_ref:  (TILE_B, 784) f32   -> bf16 cast in-kernel
    # w1_ref: (784, 256)  bf16
    # w2_ref: (256, 128)  bf16
    # w3_ref: (128, 128)  bf16 (zero-padded from (128, 10))
    # o_ref:  (TILE_B, 128) f32, unmasked lane-dense store
    x = x_ref[...].astype(jnp.bfloat16)
    h1 = jnp.dot(x, w1_ref[...], preferred_element_type=jnp.float32)
    h1 = jnp.maximum(h1, 0.0).astype(jnp.bfloat16)   # f32 ReLU, bf16 for next MXU op
    h2 = jnp.dot(h1, w2_ref[...], preferred_element_type=jnp.float32)
    h2 = jnp.maximum(h2, 0.0).astype(jnp.bfloat16)
    o_ref[...] = jnp.dot(h2, w3_ref[...], preferred_element_type=jnp.float32)


def prepare_weights(w1, w2, w3):
    """One-time weight prep (hoisted out of the per-call path)."""
    w1b = w1.astype(jnp.bfloat16)                                     # (784, 256)
    w2b = w2.astype(jnp.bfloat16)                                     # (256, 128)
    w3b = jnp.zeros((H2, OUT_PAD), jnp.bfloat16).at[:, :OUT].set(
        w3.astype(jnp.bfloat16))                                      # (128, 128)
    return w1b, w2b, w3b


def _select_tile(b):
    if b >= 2048:
        tile_b = 1024                           # multiple of 256 (v6e/v7x) and 128 (v5e)
    elif b >= 32:
        tile_b = ((pl.cdiv(b, 2) + 15) // 16) * 16   # 2 grid steps -> both v7x TCs busy
    else:
        tile_b = ((b + 15) // 16) * 16          # >=16: bf16 packs 2 rows per sublane
    b_pad = pl.cdiv(b, tile_b) * tile_b
    return tile_b, b_pad


def mlp_forward(x, w1b, w2b, w3b):
    # Glue: flatten NCHW -> (B, 784), same as torch x.view(B, -1).
    b = x.shape[0]
    x2d = x.reshape(b, -1)
    assert x2d.shape[1] == IN_FEATURES

    tile_b, b_pad = _select_tile(b)
    if b_pad != b:
        x2d = jnp.pad(x2d, ((0, b_pad - b), (0, 0)))   # batch-pad only (no K pad/cast)

    grid = (b_pad // tile_b,)
    flops = 2 * b_pad * (IN_FEATURES * H1 + H1 * H2 + H2 * OUT)
    bytes_accessed = (b_pad * IN_FEATURES * 4
                      + 2 * (w1b.size + w2b.size + w3b.size)
                      + b_pad * OUT_PAD * 4)

    out = pl.pallas_call(
        mlp_kernel,
        out_shape=jax.ShapeDtypeStruct((b_pad, OUT_PAD), jnp.float32),
        grid=grid,
        in_specs=[
            pl.BlockSpec((tile_b, IN_FEATURES), lambda i: (i, 0)),  # x tile per step
            pl.BlockSpec((IN_FEATURES, H1), lambda i: (0, 0)),      # weights resident
            pl.BlockSpec((H1, H2), lambda i: (0, 0)),               # FIXED: (256, 128)
            pl.BlockSpec((H2, OUT_PAD), lambda i: (0, 0)),
        ],
        out_specs=pl.BlockSpec((tile_b, OUT_PAD), lambda i: (i, 0)),
        compiler_params=pltpu.CompilerParams(
            dimension_semantics=("parallel",),
        ),
        cost_estimate=pl.CostEstimate(
            flops=flops, transcendentals=0, bytes_accessed=bytes_accessed),
    )(x2d, w1b, w2b, w3b)

    # Drop batch padding and the lane padding on the 10-wide logits.
    return out[:b, :OUT]


def init_params(key):
    k1, k2, k3 = jax.random.split(key, 3)
    b1 = math.sqrt(1.0 / 784)
    b2 = math.sqrt(1.0 / 256)
    b3 = math.sqrt(1.0 / 128)
    w1 = jax.random.uniform(k1, (784, 256), jnp.float32, minval=-b1, maxval=b1)
    w2 = jax.random.uniform(k2, (256, 128), jnp.float32, minval=-b2, maxval=b2)
    w3 = jax.random.uniform(k3, (128, 10), jnp.float32, minval=-b3, maxval=b3)
    return w1, w2, w3


if __name__ == "__main__":
    key = jax.random.PRNGKey(0)
    kx, kp = jax.random.split(key)

    # Small batch of MNIST-shaped inputs: NCHW (B, 1, 28, 28) -> 784 features.
    B = 8
    x = jax.random.normal(kx, (B, 1, 28, 28), jnp.float32)
    w1, w2, w3 = init_params(kp)

    # One-time weight prep (bf16 cast + W3 lane pad), then the fused forward.
    w1b, w2b, w3b = prepare_weights(w1, w2, w3)
    out = mlp_forward(x, w1b, w2b, w3b)
    out = jax.block_until_ready(out)

    # Pure-JAX f32 reference (module semantics). The kernel uses bf16 MXU
    # operands with f32 accumulation, so allow bf16-level tolerance.
    xf = x.reshape(B, -1)
    ref = jnp.maximum(xf @ w1, 0.0)
    ref = jnp.maximum(ref @ w2, 0.0)
    ref = ref @ w3
    assert out.shape == (B, 10)
    assert jnp.allclose(out, ref, atol=3e-2, rtol=3e-2), (
        float(jnp.max(jnp.abs(out - ref))))

    print("KERNEL_OK")
</pallas_src>

<mosaic_0001>
module attributes {stable_mosaic.version = 11 : i64} {
  func.func @mlp_kernel(%arg0: i32, %arg1: memref<16x784xf32, #tpu.memory_space<vmem>>, %arg2: memref<784x256xbf16, #tpu.memory_space<vmem>>, %arg3: memref<256x128xbf16, #tpu.memory_space<vmem>>, %arg4: memref<128x128xbf16, #tpu.memory_space<vmem>>, %arg5: memref<16x128xf32, #tpu.memory_space<vmem>>) attributes {dimension_semantics = [#tpu.dimension_semantics<parallel>], iteration_bounds = array<i64: 1>, scalar_prefetch = 0 : i64, scratch_operands = 0 : i64, tpu.core_type = #tpu.core_type<tc>, window_params = [{transform_indices = @transform_0, window_bounds = array<i64: 16, 784>}, {pipeline_mode = #tpu.pipeline_mode<synchronous>, transform_indices = @transform_1, window_bounds = array<i64: 784, 256>}, {pipeline_mode = #tpu.pipeline_mode<synchronous>, transform_indices = @transform_2, window_bounds = array<i64: 256, 128>}, {pipeline_mode = #tpu.pipeline_mode<synchronous>, transform_indices = @transform_3, window_bounds = array<i64: 128, 128>}, {transform_indices = @transform_4, window_bounds = array<i64: 16, 128>}]} {
    %c0 = arith.constant 0 : index
    %c0_0 = arith.constant 0 : index
    %0 = vector.load %arg1[%c0, %c0_0] : memref<16x784xf32, #tpu.memory_space<vmem>>, vector<16x784xf32>
    %1 = arith.truncf %0 : vector<16x784xf32> to vector<16x784xbf16>
    %c0_1 = arith.constant 0 : index
    %c0_2 = arith.constant 0 : index
    %2 = vector.load %arg2[%c0_1, %c0_2] : memref<784x256xbf16, #tpu.memory_space<vmem>>, vector<784x256xbf16>
    %cst = arith.constant dense<0.000000e+00> : vector<16x256xf32>
    %3 = tpu.matmul %1, %2, %cst {dimension_numbers = #tpu.dot_dimension_numbers<[1], [0], [0], [1], [0, 0, 1, 1], [], []>} : vector<16x784xbf16>, vector<784x256xbf16>, vector<16x256xf32> -> vector<16x256xf32>
    %cst_3 = arith.constant 0.000000e+00 : f32
    %4 = vector.broadcast %cst_3 : f32 to vector<16x256xf32>
    %5 = arith.maximumf %3, %4 : vector<16x256xf32>
    %6 = arith.truncf %5 : vector<16x256xf32> to vector<16x256xbf16>
    %c0_4 = arith.constant 0 : index
    %c0_5 = arith.constant 0 : index
    %7 = vector.load %arg3[%c0_4, %c0_5] : memref<256x128xbf16, #tpu.memory_space<vmem>>, vector<256x128xbf16>
    %cst_6 = arith.constant dense<0.000000e+00> : vector<16x128xf32>
    %8 = tpu.matmul %6, %7, %cst_6 {dimension_numbers = #tpu.dot_dimension_numbers<[1], [0], [0], [1], [0, 0, 1, 1], [], []>} : vector<16x256xbf16>, vector<256x128xbf16>, vector<16x128xf32> -> vector<16x128xf32>
    %cst_7 = arith.constant 0.000000e+00 : f32
    %9 = vector.broadcast %cst_7 : f32 to vector<16x128xf32>
    %10 = arith.maximumf %8, %9 : vector<16x128xf32>
    %11 = arith.truncf %10 : vector<16x128xf32> to vector<16x128xbf16>
    %c0_8 = arith.constant 0 : index
    %c0_9 = arith.constant 0 : index
    %12 = vector.load %arg4[%c0_8, %c0_9] : memref<128x128xbf16, #tpu.memory_space<vmem>>, vector<128x128xbf16>
    %cst_10 = arith.constant dense<0.000000e+00> : vector<16x128xf32>
    %13 = tpu.matmul %11, %12, %cst_10 {dimension_numbers = #tpu.dot_dimension_numbers<[1], [0], [0], [1], [0, 0, 1, 1], [], []>} : vector<16x128xbf16>, vector<128x128xbf16>, vector<16x128xf32> -> vector<16x128xf32>
    %c0_11 = arith.constant 0 : index
    %c0_12 = arith.constant 0 : index
    %14 = vector.load %arg5[%c0_11, %c0_12] : memref<16x128xf32, #tpu.memory_space<vmem>>, vector<16x128xf32>
    tpu.vector_store %arg5[%c0_11, %c0_12], %13 {strides = array<i32>} : memref<16x128xf32, #tpu.memory_space<vmem>>, vector<16x128xf32>,
    return
  }
  func.func @transform_0(%arg0: i32) -> (i32, i32) {
    %c0_i32 = arith.constant 0 : i32
    %c0_i32_0 = arith.constant 0 : i32
    return %arg0, %c0_i32 : i32, i32
  }
  func.func @transform_1(%arg0: i32) -> (i32, i32) {
    %c0_i32 = arith.constant 0 : i32
    %c0_i32_0 = arith.constant 0 : i32
    %c0_i32_1 = arith.constant 0 : i32
    return %c0_i32, %c0_i32_0 : i32, i32
  }
  func.func @transform_2(%arg0: i32) -> (i32, i32) {
    %c0_i32 = arith.constant 0 : i32
    %c0_i32_0 = arith.constant 0 : i32
    %c0_i32_1 = arith.constant 0 : i32
    return %c0_i32, %c0_i32_0 : i32, i32
  }
  func.func @transform_3(%arg0: i32) -> (i32, i32) {
    %c0_i32 = arith.constant 0 : i32
    %c0_i32_0 = arith.constant 0 : i32
    %c0_i32_1 = arith.constant 0 : i32
    return %c0_i32, %c0_i32_0 : i32, i32
  }
  func.func @transform_4(%arg0: i32) -> (i32, i32) {
    %c0_i32 = arith.constant 0 : i32
    %c0_i32_0 = arith.constant 0 : i32
    return %arg0, %c0_i32 : i32, i32
  }
}

</mosaic_0001>

<bundles_post_ra>
// kernel: tpu_custom_call.1
= control target key start
LH: loop header
LB: loop body
LE: loop exit
PB: predicated region body
PF: predicated region fallthrough
CT: control target
= control target key end

     0   :  { %9 = vsyncpa [#allocation3], 0  ;;  %s1690_s0 = inlined_call_operand.hbm [shape: f32[16,784], index: 0, kind: input, shape index: {}]   ;;  %s1691_s1 = inlined_call_operand.hbm [shape: bf16[784,256], index: 1, kind: input, shape index: {}]   ;;  %s1692_s2 = inlined_call_operand.hbm [shape: bf16[256,128], index: 2, kind: input, shape index: {}]   ;;  %s1693_s3 = inlined_call_operand.hbm [shape: bf16[128,128], index: 3, kind: input, shape index: {}]   ;;  %s1694_s4 = inlined_call_operand.hbm [shape: f32[16,128], index: 4, kind: output, shape index: {}]  }
   0x1   :  { %10 = vsyncpa [#allocation6], 0 }
   0x2   :  { %11 = vsyncpa [#allocation9], 0 }
   0x3   :  { %12 = vsyncpa [#allocation4], 0  ;;  %s1630_s15 = smov [#allocation5]  }
   0x4   :  { %s30_s16 = sshll.u32 %s1630_s15, 4  ;;  %s31_s16 = int_to_ptr.vmem [resolvable:$true] %s30_s16 }
   0x5   :  { %s1530_s17 = scalar_lea.vmem %s31_s16, 12544  ;;  %p1535_p1 = scmp.lt.s32.totalorder %s31_s16, %s31_s16 }
   0x6   :  { %p1531_p0 = scmp.ne.s32.totalorder %s31_s16, %s1530_s17  ;;  %p1536_p2 = scmp.lt.s32.totalorder %s1530_s17, %s1530_s17 }
   0x8   :  { %p1537_p3 = por %p1536_p2, %p1535_p1 }
   0xa   :  { %p1538_p4 = pnand %p1537_p3, %p1531_p0 }
   0xc   :  { %1541 = shalt.err (!%p1538_p4)
}
   0xd   :  { %s1631_s18 = smov 128   ;;  %s1632_s19 = smov 8  }
   0xe   :  { %36 = dma.hbm_to_vmem [thread:$0]  %s1691_s1, 12544, %s31_s16, [#allocation6], %s1631_s18, %s1631_s18, %s1632_s19  }
   0xf   :  { %s1633_s22 = smov [#allocation2]  }
  0x10   :  { %s18_s23 = sshll.u32 %s1633_s22, 4  ;;  %s19_s23 = int_to_ptr.vmem [resolvable:$true] %s18_s23 }
  0x11   :  { %s1550_s24 = scalar_lea.vmem %s19_s23, 1792  ;;  %p1555_p6 = scmp.lt.s32.totalorder %s19_s23, %s19_s23 }
  0x12   :  { %p1551_p5 = scmp.ne.s32.totalorder %s19_s23, %s1550_s24  ;;  %p1556_p7 = scmp.lt.s32.totalorder %s1550_s24, %s1550_s24 }
  0x14   :  { %p1557_p8 = por %p1556_p7, %p1555_p6 }
  0x16   :  { %p1558_p9 = pnand %p1557_p8, %p1551_p5 }
  0x18   :  { %1561 = shalt.err (!%p1558_p9)
}
  0x19   :  { %s1634_s25 = smov 896   ;;  %s1635_s26 = smov 56  }
  0x1a   :  { %24 = dma.hbm_to_vmem [thread:$0]  %s1690_s0, 1792, %s19_s23, [#allocation3], %s1634_s25, %s1634_s25, %s1635_s26  }
  0x1b   :  { %s1636_s29 = smov [#allocation7]  }
  0x1c   :  { %s42_s30 = sshll.u32 %s1636_s29, 4  ;;  %s43_s30 = int_to_ptr.vmem [resolvable:$true] %s42_s30 }
  0x1d   :  { %s1570_s1 = scalar_lea.vmem %s43_s30, 2048  ;;  %p1575_p11 = scmp.lt.s32.totalorder %s43_s30, %s43_s30 }
  0x1e   :  { %p1571_p10 = scmp.ne.s32.totalorder %s43_s30, %s1570_s1  ;;  %p1576_p12 = scmp.lt.s32.totalorder %s1570_s1, %s1570_s1 }
  0x20   :  { %p1577_p13 = por %p1576_p12, %p1575_p11 }
  0x22   :  { %p1578_p0 = pnand %p1577_p13, %p1571_p10 }
  0x24   :  { %1581 = shalt.err (!%p1578_p0)
}
  0x25   :  { %s1637_s5 = smov 64   ;;  %s1638_s6 = smov 4  }
  0x26   :  { %48 = dma.hbm_to_vmem [thread:$0]  %s1692_s2, 2048, %s43_s30, [#allocation6], %s1637_s5, %s1637_s5, %s1638_s6  }
  0x27   :  { %s1639_s9 = smov [#allocation8]  }
  0x28   :  { %s54_s10 = sshll.u32 %s1639_s9, 4  ;;  %s55_s10 = int_to_ptr.vmem [resolvable:$true] %s54_s10 }
  0x29   :  { %s1590_s0 = scalar_lea.vmem %s55_s10, 1024  ;;  %p1595_p2 = scmp.lt.s32.totalorder %s55_s10, %s55_s10 }
  0x2a   :  { %p1591_p1 = scmp.ne.s32.totalorder %s55_s10, %s1590_s0  ;;  %p1596_p3 = scmp.lt.s32.totalorder %s1590_s0, %s1590_s0 }
  0x2c   :  { %p1597_p4 = por %p1596_p3, %p1595_p2 }
  0x2e   :  { %p1598_p5 = pnand %p1597_p4, %p1591_p1 }
  0x30   :  { %1601 = shalt.err (!%p1598_p5)
}
  0x31   :  { %60 = dma.hbm_to_vmem [thread:$0]  %s1693_s3, 1024, %s55_s10, [#allocation9], %s1637_s5, %s1637_s5, %s1638_s6  }
  0x32   :  { %1622 = dma.done.wait [#allocation3], 1792  }
  0x33   :  { %1623 = vsyncadd [#allocation3], 4294965504 }
  0x34   :  { %1624 = dma.done.wait [#allocation6], 14592  }
  0x35   :  { %1625 = vsyncadd [#allocation6], 4294952704 }
  0x36   :  { %1626 = dma.done.wait [#allocation9], 1024  }
  0x37   :  { %1627 = vsyncadd [#allocation9], 4294966272  ;;  %v1351_v0 = vld [vmem:[#allocation5 + $0x74] ss:$8 sps:$4 sm:$0xff]   ;;  %v1355_v2 = vld [vmem:[#allocation5 + $0x70] ss:$8 sps:$4 sm:$0xff]  }
  0x38   :  { %v1353_v1 = vld [vmem:[#allocation5 + $0x174] ss:$8 sps:$4 sm:$0xff]   ;;  %687 = vmatprep.subr.bf16.mxu0 %v1351_v0  ;;  %v1356_v3 = vld [vmem:[#allocation5 + $0x170] ss:$8 sps:$4 sm:$0xff]   ;;  %v1357_v4 = vld [vmem:[#allocation5 + $0x64] ss:$8 sps:$4 sm:$0xff]  }
  0x39   :  { %730 = vmatprep.subr.bf16.mxu1 %v1353_v1  ;;  %688 = vmatpush1.bf16.msra.mxu0 %v1355_v2  ;;  %v1359_v5 = vld [vmem:[#allocation5 + $0x164] ss:$8 sps:$4 sm:$0xff]   ;;  %v1361_v6 = vld [vmem:[#allocation5 + $0x60] ss:$8 sps:$4 sm:$0xff]   ;;  %v1363_v8 = vld [vmem:[#allocation5 + $0x54] ss:$8 sps:$4 sm:$0xff]  }
  0x3a   :  { %731 = vmatpush1.bf16.msra.mxu1 %v1356_v3  ;;  %689 = vmatprep.subr.bf16.mxu0 %v1357_v4  ;;  %v1362_v7 = vld [vmem:[#allocation5 + $0x160] ss:$8 sps:$4 sm:$0xff]   ;;  %v1365_v9 = vld [vmem:[#allocation5 + $0x154] ss:$8 sps:$4 sm:$0xff]   ;;  %v1367_v10 = vld [vmem:[#allocation5 + $0x50] ss:$8 sps:$4 sm:$0xff]  }
  0x3b   :  { %732 = vmatprep.subr.bf16.mxu1 %v1359_v5  ;;  %v1368_v11 = vld [vmem:[#allocation5 + $0x150] ss:$8 sps:$4 sm:$0xff]   ;;  %v1369_v12 = vld [vmem:[#allocation5 + $0x44] ss:$8 sps:$4 sm:$0xff]   ;;  %v1373_v14 = vld [vmem:[#allocation5 + $0x40] ss:$8 sps:$4 sm:$0xff]  }
  0x3c   :  { %v1371_v13 = vld [vmem:[#allocation5 + $0x144] ss:$8 sps:$4 sm:$0xff]   ;;  %v1374_v15 = vld [vmem:[#allocation5 + $0x140] ss:$8 sps:$4 sm:$0xff]   ;;  %v1375_v16 = vld [vmem:[#allocation5 + $0x34] ss:$8 sps:$4 sm:$0xff]  }
  0x3d   :  { %690 = vmatpush1.bf16.msra.mxu0 %v1361_v6  ;;  %v1377_v17 = vld [vmem:[#allocation5 + $0x134] ss:$8 sps:$4 sm:$0xff]   ;;  %v1379_v18 = vld [vmem:[#allocation5 + $0x30] ss:$8 sps:$4 sm:$0xff]   ;;  %v1381_v20 = vld [vmem:[#allocation5 + $0x24] ss:$8 sps:$4 sm:$0xff]  }
  0x3e   :  { %733 = vmatpush1.bf16.msra.mxu1 %v1362_v7  ;;  %691 = vmatprep.subr.bf16.mxu0 %v1363_v8  ;;  %v1380_v19 = vld [vmem:[#allocation5 + $0x130] ss:$8 sps:$4 sm:$0xff]   ;;  %v1383_v21 = vld [vmem:[#allocation5 + $0x124] ss:$8 sps:$4 sm:$0xff]   ;;  %v1385_v22 = vld [vmem:[#allocation5 + $0x20] ss:$8 sps:$4 sm:$0xff]  }
  0x3f   :  { %734 = vmatprep.subr.bf16.mxu1 %v1365_v9  ;;  %v1386_v23 = vld [vmem:[#allocation5 + $0x120] ss:$8 sps:$4 sm:$0xff]   ;;  %v1387_v24 = vld [vmem:[#allocation5 + $0x14] ss:$8 sps:$4 sm:$0xff]   ;;  %v1391_v26 = vld [vmem:[#allocation5 + $0x10] ss:$8 sps:$4 sm:$0xff]  }
  0x40   :  { %v1389_v25 = vld [vmem:[#allocation5 + $0x114] ss:$8 sps:$4 sm:$0xff]   ;;  %v1392_v27 = vld [vmem:[#allocation5 + $0x110] ss:$8 sps:$4 sm:$0xff]   ;;  %v1393_v28 = vld [vmem:[#allocation5 + $0x4] ss:$8 sps:$4 sm:$0xff]  }
  0x41   :  { %692 = vmatpush1.bf16.msra.mxu0 %v1367_v10  ;;  %v1395_v29 = vld [vmem:[#allocation5 + $0x104] ss:$8 sps:$4 sm:$0xff]   ;;  %v1397_v30 = vld [vmem:[#allocation5] ss:$8 sps:$4 sm:$0xff]   ;;  %v1399_v32 = vld [vmem:[#allocation5 + $0xf4] ss:$8 sps:$4 sm:$0xff]  }
  0x42   :  { %735 = vmatpush1.bf16.msra.mxu1 %v1368_v11  ;;  %693 = vmatprep.subr.bf16.mxu0 %v1369_v12  ;;  %v1398_v31 = vld [vmem:[#allocation5 + $0x100] ss:$8 sps:$4 sm:$0xff]   ;;  %v1401_v33 = vld [vmem:[#allocation5 + $0x1f4] ss:$8 sps:$4 sm:$0xff]   ;;  %v1403_v34 = vld [vmem:[#allocation5 + $0xf0] ss:$8 sps:$4 sm:$0xff]  }
  0x43   :  { %736 = vmatprep.subr.bf16.mxu1 %v1371_v13  ;;  %v1404_v35 = vld [vmem:[#allocation5 + $0x1f0] ss:$8 sps:$4 sm:$0xff]   ;;  %v1405_v36 = vld [vmem:[#allocation5 + $0xe4] ss:$8 sps:$4 sm:$0xff]   ;;  %v1409_v38 = vld [vmem:[#allocation5 + $0xe0] ss:$8 sps:$4 sm:$0xff]  }
  0x44   :  { %v1407_v37 = vld [vmem:[#allocation5 + $0x1e4] ss:$8 sps:$4 sm:$0xff]   ;;  %v1410_v39 = vld [vmem:[#allocation5 + $0x1e0] ss:$8 sps:$4 sm:$0xff]   ;;  %v1411_v40 = vld [vmem:[#allocation5 + $0xd4] ss:$8 sps:$4 sm:$0xff]  }
  0x45   :  { %694 = vmatpush1.bf16.msra.mxu0 %v1373_v14  ;;  %v1413_v41 = vld [vmem:[#allocation5 + $0x1d4] ss:$8 sps:$4 sm:$0xff]   ;;  %v1415_v42 = vld [vmem:[#allocation5 + $0xd0] ss:$8 sps:$4 sm:$0xff]   ;;  %v1417_v44 = vld [vmem:[#allocation5 + $0xc4] ss:$8 sps:$4 sm:$0xff]  }
  0x46   :  { %737 = vmatpush1.bf16.msra.mxu1 %v1374_v15  ;;  %695 = vmatprep.subr.bf16.mxu0 %v1375_v16  ;;  %v1416_v43 = vld [vmem:[#allocation5 + $0x1d0] ss:$8 sps:$4 sm:$0xff]   ;;  %v1419_v45 = vld [vmem:[#allocation5 + $0x1c4] ss:$8 sps:$4 sm:$0xff]   ;;  %v1421_v50 = vld [vmem:[#allocation5 + $0xc0] ss:$8 sps:$4 sm:$0xff]  }
  0x47   :  { %738 = vmatprep.subr.bf16.mxu1 %v1377_v17  ;;  %v75_v46 = vld [vmem:[#allocation2 + $0x8] sm:$0xff]  ;;  %v82_v47 = vld [vmem:[#allocation2 + $0x40] sm:$0xff]  ;;  %v77_v48 = vld [vmem:[#allocation2 + $0x18] sm:$0xff]  ;;  %vm683_vm0 = vcmask 130048   ;;  %vm1642_vm1 = vmmov 0   ;;  %s1643_s2 = smov [#allocation10]  }
  0x48   :  { %v84_v49 = vld [vmem:[#allocation2 + $0x50] sm:$0xff]  ;;  %v1423_v52 = vld [vmem:[#allocation5 + $0xb4] ss:$8 sps:$4 sm:$0xff]   ;;  %v89_v53 = vpack.c.bf16 %v82_v47, %v75_v46  ;;  %v1427_v56 = vld [vmem:[#allocation5 + $0xb0] ss:$8 sps:$4 sm:$0xff]   ;;  %s1149_s3 = sshll.u32 %s1643_s2, 4  ;;  %s1150_s3 = int_to_ptr.vmem [resolvable:$true] %s1149_s3 }
  0x49   :  { %696 = vmatpush1.bf16.msra.mxu0 %v1379_v18  ;;  %v1422_v51 = vld [vmem:[#allocation5 + $0x1c0] ss:$8 sps:$4 sm:$0xff]   ;;  %v91_v54 = vpack.c.bf16 %v84_v49, %v77_v48  ;;  %v1425_v55 = vld [vmem:[#allocation5 + $0x1b4] ss:$8 sps:$4 sm:$0xff]   ;;  %v1428_v57 = vld [vmem:[#allocation5 + $0x1b0] ss:$8 sps:$4 sm:$0xff]   ;;  %p1607_p7 = scmp.lt.s32.totalorder %s1150_s3, %s1150_s3 }
  0x4a   :  { %739 = vmatpush1.bf16.msra.mxu1 %v1380_v19  ;;  %697 = vmatprep.subr.bf16.mxu0 %v1381_v20  ;;  %v1429_v58 = vld [vmem:[#allocation5 + $0xa4] ss:$8 sps:$4 sm:$0xff]   ;;  %v1433_v60 = vld [vmem:[#allocation5 + $0xa0] ss:$8 sps:$4 sm:$0xff]   ;;  %v1435_v62 = vld [vmem:[#allocation5 + $0x94] ss:$8 sps:$4 sm:$0xff]  }
  0x4b   :  { %740 = vmatprep.subr.bf16.mxu1 %v1383_v21  ;;  %719 = vmatprep.mubr.bf16.mxu0 %v89_v53  ;;  %v1431_v59 = vld [vmem:[#allocation5 + $0x1a4] ss:$8 sps:$4 sm:$0xff]   ;;  %v1434_v61 = vld [vmem:[#allocation5 + $0x1a0] ss:$8 sps:$4 sm:$0xff]   ;;  %v1437_v63 = vld [vmem:[#allocation5 + $0x194] ss:$8 sps:$4 sm:$0xff]  }
  0x4c   :  { %762 = vmatprep.mubr.bf16.mxu1 %v91_v54  ;;  %v1439_v0 = vld [vmem:[#allocation5 + $0x90] ss:$8 sps:$4 sm:$0xff]   ;;  %v1441_v2 = vld [vmem:[#allocation5 + $0x84] ss:$8 sps:$4 sm:$0xff]   ;;  %v1445_v4 = vld [vmem:[#allocation5 + $0x80] ss:$8 sps:$4 sm:$0xff]  }
  0x4d   :  { %698 = vmatpush1.bf16.msra.mxu0 %v1385_v22  ;;  %v1440_v1 = vld [vmem:[#allocation5 + $0x190] ss:$8 sps:$4 sm:$0xff]   ;;  %v1443_v3 = vld [vmem:[#allocation5 + $0x184] ss:$8 sps:$4 sm:$0xff]   ;;  %v1446_v5 = vld [vmem:[#allocation5 + $0x180] ss:$8 sps:$4 sm:$0xff]  }
  0x4e   :  { %741 = vmatpush1.bf16.msra.mxu1 %v1386_v23  ;;  %699 = vmatprep.subr.bf16.mxu0 %v1387_v24  ;;  %v74_v6 = vld [vmem:[#allocation2] sm:$0xff]  ;;  %v81_v7 = vld [vmem:[#allocation2 + $0x38] sm:$0xff]  ;;  %v76_v8 = vld [vmem:[#allocation2 + $0x10] sm:$0xff]  ;;  %v1640_v24 = vmov 0   ;;  %s1602_s13 = scalar_lea.vmem %s1150_s3, 256 }
  0x4f   :  { %742 = vmatprep.subr.bf16.mxu1 %v1389_v25  ;;  %v83_v9 = vld [vmem:[#allocation2 + $0x48] sm:$0xff]  ;;  %v88_v11 = vpack.c.bf16 %v81_v7, %v74_v6  ;;  %v1452_v14 = vld [vmem:[#allocation5 + $0x264] ss:$8 sps:$4 sm:$0xff]   ;;  %v1492_v15 = vld [vmem:[#allocation5 + $0x300] ss:$8 sps:$4 sm:$0xff]   ;;  %p1603_p6 = scmp.ne.s32.totalorder %s1150_s3, %s1602_s13  ;;  %p1608_p8 = scmp.lt.s32.totalorder %s1602_s13, %s1602_s13 }
  0x50   :  { %v1449_v10 = vld [vmem:[#allocation5 + $0x274] ss:$8 sps:$4 sm:$0xff]   ;;  %v90_v12 = vpack.c.bf16 %v83_v9, %v76_v8  ;;  %v1447_v13 = vld [vmem:[#allocation5 + $0x270] ss:$8 sps:$4 sm:$0xff]   ;;  %v1494_v16 = vld [vmem:[#allocation5 + $0x304] ss:$8 sps:$4 sm:$0xff]  }
  0x51   :  { %700 = vmatpush1.bf16.msra.mxu0 %v1391_v26  ;;  %v1450_v17 = vld [vmem:[#allocation5 + $0x260] ss:$8 sps:$4 sm:$0xff]   ;;  %v87_v19 = vld [vmem:[#allocation2 + $0x68] sm:$0xff]  ;;  %v86_v22 = vld [vmem:[#allocation2 + $0x60] sm:$0xff]  ;;  %v1641_v8 = vmov 0.0   ;;  %p1609_p9 = por %p1608_p8, %p1607_p7 }
  0x52   :  { %743 = vmatpush1.bf16.msra.mxu1 %v1392_v27  ;;  %701 = vmatprep.subr.bf16.mxu0 %v1393_v28  ;;  %v80_v18 = vld [vmem:[#allocation2 + $0x30] sm:$0xff]  ;;  %v79_v20 = vld [vmem:[#allocation2 + $0x28] sm:$0xff]  ;;  %v78_v53 = vld [vmem:[#allocation2 + $0x20] sm:$0xff] }
  0x53   :  { %744 = vmatprep.subr.bf16.mxu1 %v1395_v29  ;;  %v1455_v21 = vld [vmem:[#allocation5 + $0x254] ss:$8 sps:$4 sm:$0xff]   ;;  %v1453_v23 = vld [vmem:[#allocation5 + $0x250] ss:$8 sps:$4 sm:$0xff]   ;;  %v93_v25 = vpack.c.bf16 %v86_v22, %v79_v20  ;;  %v1458_v26 = vld [vmem:[#allocation5 + $0x244] ss:$8 sps:$4 sm:$0xff]   ;;  %v94_v27 = vpack.c.bf16 %v87_v19, %v80_v18  ;;  %p1610_p10 = pnand %p1609_p9, %p1603_p6 }
  0x54   :  { %v1456_v28 = vld [vmem:[#allocation5 + $0x240] ss:$8 sps:$4 sm:$0xff]   ;;  %v1461_v29 = vld [vmem:[#allocation5 + $0x234] ss:$8 sps:$4 sm:$0xff]   ;;  %v1483_v46 = vld [vmem:[#allocation5 + $0x2b0] ss:$8 sps:$4 sm:$0xff]  }
  0x55   :  { %702 = vmatpush1.bf16.msra.mxu0 %v1397_v30  ;;  %v1459_v30 = vld [vmem:[#allocation5 + $0x230] ss:$8 sps:$4 sm:$0xff]   ;;  %v1488_v47 = vld [vmem:[#allocation5 + $0x2a4] ss:$8 sps:$4 sm:$0xff]   ;;  %v1486_v48 = vld [vmem:[#allocation5 + $0x2a0] ss:$8 sps:$4 sm:$0xff]  }
  0x56   :  { %745 = vmatpush1.bf16.msra.mxu1 %v1398_v31  ;;  %703 = vmatprep.subr.bf16.mxu0 %v1399_v32  ;;  %v1464_v31 = vld [vmem:[#allocation5 + $0x224] ss:$8 sps:$4 sm:$0xff]   ;;  %v1462_v32 = vld [vmem:[#allocation5 + $0x220] ss:$8 sps:$4 sm:$0xff]   ;;  %v1491_v49 = vld [vmem:[#allocation5 + $0x294] ss:$8 sps:$4 sm:$0xff]  }
  0x57   :  { %746 = vmatprep.subr.bf16.mxu1 %v1401_v33  ;;  %v1467_v33 = vld [vmem:[#allocation5 + $0x214] ss:$8 sps:$4 sm:$0xff]   ;;  %v85_v54 = vld [vmem:[#allocation2 + $0x58] sm:$0xff] }
  0x58   :  { %v1512_v6 = vld [vmem:[#allocation7 + $0x40] sm:$0xff]  }
  0x59   :  { %704 = vmatpush2.bf16.msra.mxu0 %v1403_v34  ;;  %v1465_v34 = vld [vmem:[#allocation5 + $0x210] ss:$8 sps:$4 sm:$0xff]  }
  0x5a   :  { %747 = vmatpush2.bf16.msra.mxu1 %v1404_v35  ;;  %705 = vmatprep.subr.bf16.mxu0 %v1405_v36  ;;  %v1470_v35 = vld [vmem:[#allocation5 + $0x204] ss:$8 sps:$4 sm:$0xff]   ;;  %v1468_v36 = vld [vmem:[#allocation5 + $0x200] ss:$8 sps:$4 sm:$0xff]   ;;  %v1513_v7 = vld [vmem:[#allocation7] sm:$0xff]  }
  0x5b   :  { %748 = vmatprep.subr.bf16.mxu1 %v1407_v37  ;;  %v1473_v37 = vld [vmem:[#allocation5 + $0x2f4] ss:$8 sps:$4 sm:$0xff]  }
  0x5d   :  { %706 = vmatpush2.bf16.msra.mxu0 %v1409_v38  ;;  %v1471_v38 = vld [vmem:[#allocation5 + $0x2f0] ss:$8 sps:$4 sm:$0xff]  }
  0x5e   :  { %749 = vmatpush2.bf16.msra.mxu1 %v1410_v39  ;;  %707 = vmatprep.subr.bf16.mxu0 %v1411_v40  ;;  %v1476_v39 = vld [vmem:[#allocation5 + $0x2e4] ss:$8 sps:$4 sm:$0xff]   ;;  %v1474_v40 = vld [vmem:[#allocation5 + $0x2e0] ss:$8 sps:$4 sm:$0xff]  }
  0x5f   :  { %750 = vmatprep.subr.bf16.mxu1 %v1413_v41  ;;  %v1479_v41 = vld [vmem:[#allocation5 + $0x2d4] ss:$8 sps:$4 sm:$0xff]  }
  0x61   :  { %708 = vmatpush2.bf16.msra.mxu0 %v1415_v42  ;;  %v1477_v42 = vld [vmem:[#allocation5 + $0x2d0] ss:$8 sps:$4 sm:$0xff]  }
  0x62   :  { %751 = vmatpush2.bf16.msra.mxu1 %v1416_v43  ;;  %709 = vmatprep.subr.bf16.mxu0 %v1417_v44  ;;  %v1482_v43 = vld [vmem:[#allocation5 + $0x2c4] ss:$8 sps:$4 sm:$0xff]   ;;  %v1480_v44 = vld [vmem:[#allocation5 + $0x2c0] ss:$8 sps:$4 sm:$0xff]  }
  0x63   :  { %752 = vmatprep.subr.bf16.mxu1 %v1419_v45  ;;  %v1485_v45 = vld [vmem:[#allocation5 + $0x2b4] ss:$8 sps:$4 sm:$0xff]  }
  0x65   :  { %710 = vmatpush2.bf16.msra.mxu0 %v1421_v50  ;;  %v1489_v50 = vld [vmem:[#allocation5 + $0x290] ss:$8 sps:$4 sm:$0xff]  }
  0x66   :  { %753 = vmatpush2.bf16.msra.mxu1 %v1422_v51  ;;  %711 = vmatprep.subr.bf16.mxu0 %v1423_v52  ;;  %v1497_v51 = vld [vmem:[#allocation5 + $0x284] ss:$8 sps:$4 sm:$0xff]   ;;  %v1495_v52 = vld [vmem:[#allocation5 + $0x280] ss:$8 sps:$4 sm:$0xff]  }
  0x67   :  { %754 = vmatprep.subr.bf16.mxu1 %v1425_v55  ;;  %v92_v55 = vpack.c.bf16 %v85_v54, %v78_v53 }
  0x69   :  { %712 = vmatpush2.bf16.msra.mxu0 %v1427_v56  ;;  %v1498_v56 = vld [vmem:[#allocation7 + $0x78] sm:$0xff]  }
  0x6a   :  { %755 = vmatpush2.bf16.msra.mxu1 %v1428_v57  ;;  %713 = vmatprep.subr.bf16.mxu0 %v1429_v58  ;;  %v1499_v57 = vld [vmem:[#allocation7 + $0x38] sm:$0xff]   ;;  %v1500_v58 = vld [vmem:[#allocation7 + $0x70] sm:$0xff]  }
  0x6b   :  { %756 = vmatprep.subr.bf16.mxu1 %v1431_v59  ;;  %v1501_v59 = vld [vmem:[#allocation7 + $0x30] sm:$0xff]  }
  0x6d   :  { %714 = vmatpush2.bf16.msra.mxu0 %v1433_v60  ;;  %v1502_v60 = vld [vmem:[#allocation7 + $0x68] sm:$0xff]  }
  0x6e   :  { %757 = vmatpush2.bf16.msra.mxu1 %v1434_v61  ;;  %715 = vmatprep.subr.bf16.mxu0 %v1435_v62  ;;  %v1503_v61 = vld [vmem:[#allocation7 + $0x28] sm:$0xff]   ;;  %v1504_v62 = vld [vmem:[#allocation7 + $0x60] sm:$0xff]  }
  0x6f   :  { %758 = vmatprep.subr.bf16.mxu1 %v1437_v63  ;;  %v1505_v63 = vld [vmem:[#allocation7 + $0x20] sm:$0xff]  }
  0x71   :  { %716 = vmatpush2.bf16.msra.mxu0 %v1439_v0  ;;  %v1506_v0 = vld [vmem:[#allocation7 + $0x58] sm:$0xff]  }
  0x72   :  { %759 = vmatpush2.bf16.msra.mxu1 %v1440_v1  ;;  %717 = vmatprep.subr.bf16.mxu0 %v1441_v2  ;;  %v1507_v1 = vld [vmem:[#allocation7 + $0x18] sm:$0xff]   ;;  %v1508_v2 = vld [vmem:[#allocation7 + $0x50] sm:$0xff]  }
  0x73   :  { %760 = vmatprep.subr.bf16.mxu1 %v1443_v3  ;;  %v1509_v3 = vld [vmem:[#allocation7 + $0x10] sm:$0xff]  }
  0x75   :  { %718 = vmatpush2.bf16.msra.mxu0 %v1445_v4  ;;  %v1510_v4 = vld [vmem:[#allocation7 + $0x48] sm:$0xff]  }
  0x76   :  { %761 = vmatpush2.bf16.msra.mxu1 %v1446_v5  ;;  %773 = vmatprep.subr.bf16.mxu0 %v1449_v10  ;;  %v1511_v5 = vld [vmem:[#allocation7 + $0x8] sm:$0xff]  }
  0x77   :  { %830 = vmatprep.subr.bf16.mxu1 %v1494_v16 }
  0x78   :  { %720 = vmatmul.mubr.bf16.vlgmr.msra.gmra.mxu0 %v88_v11 }
  0x79   :  { %763 = vmatmul.mubr.bf16.vlgmr.msra.gmra.mxu1 %v90_v12  ;;  %774 = vmatpush1.bf16.msra.mxu0 %v1447_v13 }
  0x7a   :  { %775 = vmatprep.subr.bf16.mxu0 %v1452_v14  ;;  %831 = vmatpush1.bf16.msra.mxu1 %v1492_v15 }
  0x7b   :  { %848 = vmatprep.mubr.bf16.mxu1 %v1640_v24  ;;  %805 = vmatprep.mubr.bf16.mxu0 %v93_v25 }
  0x7c   :  { %1286 = vmatprep.subr.bf16.mxu1 %v1498_v56 }
  0x7d   :  { %776 = vmatpush1.bf16.msra.mxu0 %v1450_v17 }
  0x7e   :  { %777 = vmatprep.subr.bf16.mxu0 %v1455_v21 }
  0x81   :  { %1261 = vmatmul.mubr.msk.bf16.vlgmr.msra.gmra.mxu1 %vm683_vm0, %v94_v27  ;;  %778 = vmatpush1.bf16.msra.mxu0 %v1453_v23 }
  0x82   :  { %779 = vmatprep.subr.bf16.mxu0 %v1458_v26  ;;  %1287 = vmatpush3.bf16.msra.mxu1 %v1499_v57 }
  0x83   :  { %1288 = vmatprep.subr.bf16.mxu1 %v1500_v58 }
  0x85   :  { %780 = vmatpush1.bf16.msra.mxu0 %v1456_v28 }
  0x86   :  { %781 = vmatprep.subr.bf16.mxu0 %v1461_v29  ;;  %1289 = vmatpush3.bf16.msra.mxu1 %v1501_v59 }
  0x87   :  { %1290 = vmatprep.subr.bf16.mxu1 %v1502_v60 }
  0x89   :  { %782 = vmatpush1.bf16.msra.mxu0 %v1459_v30 }
  0x8a   :  { %783 = vmatprep.subr.bf16.mxu0 %v1464_v31  ;;  %1291 = vmatpush3.bf16.msra.mxu1 %v1503_v61 }
  0x8b   :  { %1292 = vmatprep.subr.bf16.mxu1 %v1504_v62 }
  0x8d   :  { %784 = vmatpush1.bf16.msra.mxu0 %v1462_v32 }
  0x8e   :  { %785 = vmatprep.subr.bf16.mxu0 %v1467_v33  ;;  %1293 = vmatpush3.bf16.msra.mxu1 %v1505_v63 }
  0x8f   :  { %1294 = vmatprep.subr.bf16.mxu1 %v1506_v0 }
  0x91   :  { %786 = vmatpush1.bf16.msra.mxu0 %v1465_v34 }
  0x92   :  { %787 = vmatprep.subr.bf16.mxu0 %v1470_v35  ;;  %1295 = vmatpush3.bf16.msra.mxu1 %v1507_v1 }
  0x93   :  { %1296 = vmatprep.subr.bf16.mxu1 %v1508_v2 }
  0x95   :  { %788 = vmatpush1.bf16.msra.mxu0 %v1468_v36 }
  0x96   :  { %789 = vmatprep.subr.bf16.mxu0 %v1473_v37  ;;  %1297 = vmatpush3.bf16.msra.mxu1 %v1509_v3 }
  0x97   :  { %1298 = vmatprep.subr.bf16.mxu1 %v1510_v4 }
  0x99   :  { %790 = vmatpush2.bf16.msra.mxu0 %v1471_v38 }
  0x9a   :  { %791 = vmatprep.subr.bf16.mxu0 %v1476_v39  ;;  %1299 = vmatpush3.bf16.msra.mxu1 %v1511_v5 }
  0x9b   :  { %1300 = vmatprep.subr.bf16.mxu1 %v1512_v6 }
  0x9d   :  { %792 = vmatpush2.bf16.msra.mxu0 %v1474_v40 }
  0x9e   :  { %793 = vmatprep.subr.bf16.mxu0 %v1479_v41  ;;  %1301 = vmatpush3.bf16.msra.mxu1 %v1513_v7 }
  0x9f   :  { %1317 = vmatprep.subr.bf16.mxu1 %v1641_v8 }
  0xa1   :  { %794 = vmatpush2.bf16.msra.mxu0 %v1477_v42  ;;  %v1514_v42 = vld [vmem:[#allocation8 + $0x38] sm:$0xff]  }
  0xa2   :  { %795 = vmatprep.subr.bf16.mxu0 %v1482_v43 }
  0xa5   :  { %796 = vmatpush2.bf16.msra.mxu0 %v1480_v44  ;;  %v1515_v44 = vld [vmem:[#allocation8 + $0x30] sm:$0xff]  }
  0xa6   :  { %797 = vmatprep.subr.bf16.mxu0 %v1485_v45  ;;  %v1516_v45 = vld [vmem:[#allocation8 + $0x28] sm:$0xff]  }
  0xa9   :  { %798 = vmatpush2.bf16.msra.mxu0 %v1483_v46  ;;  %v1517_v46 = vld [vmem:[#allocation8 + $0x20] sm:$0xff]  }
  0xaa   :  { %799 = vmatprep.subr.bf16.mxu0 %v1488_v47  ;;  %v1518_v47 = vld [vmem:[#allocation8 + $0x18] sm:$0xff]  }
  0xad   :  { %800 = vmatpush2.bf16.msra.mxu0 %v1486_v48  ;;  %v1519_v48 = vld [vmem:[#allocation8 + $0x10] sm:$0xff]  }
  0xae   :  { %801 = vmatprep.subr.bf16.mxu0 %v1491_v49  ;;  %v1520_v49 = vld [vmem:[#allocation8 + $0x8] sm:$0xff]  }
  0xb1   :  { %802 = vmatpush2.bf16.msra.mxu0 %v1489_v50  ;;  %v1521_v50 = vld [vmem:[#allocation8] sm:$0xff]  }
  0xb2   :  { %803 = vmatprep.subr.bf16.mxu0 %v1497_v51 }
  0xb5   :  { %804 = vmatpush2.bf16.msra.mxu0 %v1495_v52 }
  0xb8   :  { %806 = vmatmul.mubr.bf16.vlgmr.msra.gmra.mxu0 %v92_v55 }
 0x138   :  { %v721_v10 = vpop.f32.mrf.mxu0 }
 0x139   :  { %v764_v9 = vpop.f32.mrf.mxu1 }
 0x13a   :  { %v723_v12 = vpop.f32.mrf.mxu0  ;;  %v765_v21 = vadd.f32 %v764_v9, %v721_v10 }
 0x13b   :  { %v766_v11 = vpop.f32.mrf.mxu1 }
 0x13c   :  { %v725_v14 = vpop.f32.mrf.mxu0  ;;  %v767_v20 = vadd.f32 %v766_v11, %v723_v12 }
 0x13d   :  { %v768_v13 = vpop.f32.mrf.mxu1 }
 0x13e   :  { %v727_v17 = vpop.f32.mrf.mxu0  ;;  %v769_v23 = vadd.f32 %v768_v13, %v725_v14 }
 0x13f   :  { %v770_v15 = vpop.f32.mrf.mxu1 }
 0x140   :  { %v771_v28 = vadd.f32 %v770_v15, %v727_v17 }
 0x141   :  { %v850_v16 = vpop.f32.mrf.mxu1 }
 0x143   :  { %v852_v18 = vpop.f32.mrf.mxu1 }
 0x145   :  { %v854_v26 = vpop.f32.mrf.mxu1 }
 0x147   :  { %v856_v35 = vpop.f32.mrf.mxu1 }
 0x178   :  { %v807_v19 = vpop.f32.mrf.mxu0 }
 0x179   :  { %v808_v25 = vadd.f32 %v807_v19, %v765_v21 }
 0x17a   :  { %v809_v22 = vpop.f32.mrf.mxu0 }
 0x17b   :  { %v810_v24 = vadd.f32 %v809_v22, %v767_v20  ;;  %v851_v34 = vadd.f32 %v850_v16, %v808_v25 }
 0x17c   :  { %v811_v27 = vpop.f32.mrf.mxu0 }
 0x17d   :  { %v812_v29 = vadd.f32 %v811_v27, %v769_v23  ;;  %v853_v31 = vadd.f32 %v852_v18, %v810_v24  ;;  %v859_v40 = vmax.f32 %v851_v34, 0.0 }
 0x17e   :  { %v813_v30 = vpop.f32.mrf.mxu0 }
 0x17f   :  { %v855_v32 = vadd.f32 %v854_v26, %v812_v29  ;;  %v814_v33 = vadd.f32 %v813_v30, %v771_v28  ;;  %v860_v38 = vmax.f32 %v853_v31, 0.0 }
 0x181   :  { %v857_v36 = vadd.f32 %v856_v35, %v814_v33  ;;  %v861_v37 = vmax.f32 %v855_v32, 0.0 }
 0x183   :  { %v862_v39 = vmax.f32 %v857_v36, 0.0  ;;  %v863_v43 = vpack.c.bf16 %v861_v37, %v859_v40 }
 0x185   :  { %v864_v41 = vpack.c.bf16 %v862_v39, %v860_v38 }
 0x187   :  { %1025 = vmatprep.mubr.bf16.mxu1 %v864_v41 }
 0x188   :  { %1026 = vmatmul.mubr.bf16.vlgmr.msra.gmra.mxu1 %v863_v43 }
 0x189   :  { %1318 = vmatpush3.bf16.msra.mxu1 %v1514_v42  ;;  %1333 = vmatprep.mubr.msk.bf16.mxu1 %vm1642_vm1, %v1641_v8 }
 0x18a   :  { %1319 = vmatprep.subr.bf16.mxu1 %v1641_v8 }
 0x18d   :  { %1320 = vmatpush3.bf16.msra.mxu1 %v1515_v44 }
 0x18e   :  { %1321 = vmatprep.subr.bf16.mxu1 %v1641_v8 }
 0x191   :  { %1322 = vmatpush3.bf16.msra.mxu1 %v1516_v45 }
 0x192   :  { %1323 = vmatprep.subr.bf16.mxu1 %v1641_v8 }
 0x195   :  { %1324 = vmatpush3.bf16.msra.mxu1 %v1517_v46 }
 0x196   :  { %1325 = vmatprep.subr.bf16.mxu1 %v1641_v8 }
 0x199   :  { %1326 = vmatpush3.bf16.msra.mxu1 %v1518_v47 }
 0x19a   :  { %1327 = vmatprep.subr.bf16.mxu1 %v1641_v8 }
 0x19d   :  { %1328 = vmatpush3.bf16.msra.mxu1 %v1519_v48 }
 0x19e   :  { %1329 = vmatprep.subr.bf16.mxu1 %v1641_v8 }
 0x1a1   :  { %1330 = vmatpush3.bf16.msra.mxu1 %v1520_v49 }
 0x1a2   :  { %1331 = vmatprep.subr.bf16.mxu1 %v1641_v8 }
 0x1a5   :  { %1332 = vmatpush3.bf16.msra.mxu1 %v1521_v50 }
 0x248   :  { %v1302_v51 = vpop.f32.mrf.mxu1 }
 0x24a   :  { %v1303_v52 = vpop.f32.mrf.mxu1 }
 0x24b   :  { %v1304_v54 = vadd.f32 %v1303_v52, %v1302_v51 }
 0x24c   :  { %v1305_v53 = vpop.f32.mrf.mxu1 }
 0x24d   :  { %v1034_v57 = vmax.f32 %v1304_v54, 0.0 }
 0x24e   :  { %v1306_v55 = vpop.f32.mrf.mxu1 }
 0x24f   :  { %v1307_v56 = vadd.f32 %v1306_v55, %v1305_v53 }
 0x251   :  { %v1035_v58 = vmax.f32 %v1307_v56, 0.0 }
 0x253   :  { %v1036_v59 = vpack.c.bf16 %v1035_v58, %v1034_v57 }
 0x255   :  { %1334 = vmatmul.mubr.bf16.vlgmr.msra.gmra.mxu1 %v1036_v59 }
 0x315   :  { %v1135_v60 = vpop.f32.mrf.mxu1 }
 0x316   :  { %1142 = vst [vmem:[#allocation10] sm:$0xff] %v1135_v60 }
 0x317   :  { %v1335_v61 = vpop.f32.mrf.mxu1 }
 0x319   :  { %v1138_v62 = vpop.f32.mrf.mxu1 }
 0x31a   :  { %1143 = vst [vmem:[#allocation10 + $0x8] sm:$0xff] %v1138_v62 }
 0x31b   :  { %v1336_v63 = vpop.f32.mrf.mxu1 }
 0x31c   :  { %1613 = shalt.err (!%p1610_p10)
}
 0x31d   :  { %1155 = dma.vmem_to_hbm [thread:$0]  %s1150_s3, 256, %s1694_s4, [#allocation4], %s1631_s18, %s1631_s18, %s1632_s19  }
 0x31e   :  { %1628 = dma.done.wait [#allocation4], 256  }
 0x31f   :  { %1629 = vsyncadd [#allocation4], 4294967040 }
 0x320   :  { %1159 = vsyncpa [#allocation3], 1 }
 0x321   :  { %1160 = vsyncpa [#allocation6], 1 }
 0x322   :  { %1161 = vsyncpa [#allocation9], 1 }
 0x323   :  { %1162 = vsyncpa [#allocation4], 1 }

</bundles_post_ra>
